<compile_context>
chip_gen: v7x
topology: tpu7x:2x2x1
jax: 0.10.0
libtpu: 0.0.40
codegen_flags: <defaults>
</compile_context>

<pallas_src>
import functools
import math

import jax
import jax.numpy as jnp
from jax.experimental import pallas as pl
from jax.experimental.pallas import tpu as pltpu


# --------------------------------------------------------------------------
# hardware queries (best-effort, safe fallbacks)
# --------------------------------------------------------------------------
def _vmem_capacity_bytes():
    try:
        info = pltpu.get_tpu_info()
        for attr in ("vmem_capacity_bytes", "vmem_bytes", "vmem_size_bytes"):
            v = getattr(info, attr, None)
            if isinstance(v, int) and v > 0:
                return v
    except Exception:
        pass
    return 64 * 1024 * 1024           # conservative: v7x per-TC VMEM


def _num_tensorcores():
    try:
        kind = jax.devices()[0].device_kind.lower()
        if "v7" in kind:              # 2 TensorCores per chip
            return 2
    except Exception:
        pass
    try:
        info = pltpu.get_tpu_info()
        for attr in ("num_cores", "core_count", "num_tensorcores"):
            v = getattr(info, attr, None)
            if isinstance(v, int) and v > 0:
                return min(int(v), 2)
    except Exception:
        pass
    return 1                          # v5e / v6e: single TC (safe default)


# --------------------------------------------------------------------------
# kernel
# --------------------------------------------------------------------------
def _ila_kernel(ori_ref, tar_ref, att_ref, wv_ref, vv_ref, *,
                n_lane, tk, n_pp, d_per_row):
    """Accumulate per-row, per-lane partials of sum(W*V) and sum(V*V).

    ori/tar/att refs: (rows, tk) feature tile.
    wv/vv refs:       (rows, 128) lane-partial accumulators, resident across
                      the feature-tile grid axis (output block index is
                      constant in k).
    """
    p = pl.program_id(0)
    k = pl.program_id(1)
    k_global = p * n_pp + k            # logical tile index (may exceed range
    tile_base = k_global * tk          # on the clamped phantom step -> masked)

    rows = ori_ref.shape[0]
    lane = jax.lax.broadcasted_iota(jnp.int32, (rows, 128), 1)

    def chunk(off, wv_p, vv_p):
        o = ori_ref[:, pl.ds(off, 128)].astype(jnp.float32)
        t = tar_ref[:, pl.ds(off, 128)].astype(jnp.float32)
        a = att_ref[:, pl.ds(off, 128)].astype(jnp.float32)
        w = a - o                                       # W chunk
        v = t - o                                       # V chunk
        m = lane < (d_per_row - tile_base - off)        # ragged-tail mask
        wv_p = wv_p + jnp.where(m, w * v, 0.0)
        vv_p = vv_p + jnp.where(m, v * v, 0.0)
        return wv_p, vv_p

    zeros = jnp.zeros((rows, 128), jnp.float32)

    if n_lane <= 16:
        # small tile: full static unroll, two accumulator pairs (even/odd)
        acc = [zeros, zeros, zeros, zeros]
        for c in range(n_lane):
            i = 2 * (c & 1)
            acc[i], acc[i + 1] = chunk(c * 128, acc[i], acc[i + 1])
        wv0, vv0, wv1, vv1 = acc
    else:
        # large tile: fori_loop over 256-lane sub-slabs, modest unroll,
        # two independent accumulator pairs for ILP.
        assert n_lane % 2 == 0, "tk must be a multiple of 256 for this path"

        def body(i, carry):
            wv0, vv0, wv1, vv1 = carry
            base = pl.multiple_of(i * 256, 256)
            wv0, vv0 = chunk(base, wv0, vv0)
            wv1, vv1 = chunk(pl.multiple_of(base + 128, 128), wv1, vv1)
            return wv0, vv0, wv1, vv1

        wv0, vv0, wv1, vv1 = jax.lax.fori_loop(
            0, n_lane // 2, body, (zeros, zeros, zeros, zeros), unroll=4)

    wv_p = wv0 + wv1
    vv_p = vv0 + vv1

    @pl.when(k == 0)
    def _():
        wv_ref[...] = wv_p
        vv_ref[...] = vv_p

    @pl.when(k != 0)
    def _():
        wv_ref[...] += wv_p
        vv_ref[...] += vv_p


# --------------------------------------------------------------------------
# wrapper
# --------------------------------------------------------------------------
def _ila_jax(ori, tar, att, bs):
    ori = ori.astype(jnp.float32)
    tar = tar.astype(jnp.float32)
    att = att.astype(jnp.float32)
    W = att - ori
    V = tar - ori
    V = V / jnp.linalg.norm(V, axis=1, keepdims=True)
    return jnp.sum(W * V) / bs


def ila_pallas(ori_mid, tar_mid, att_mid, *, block_bytes=None, ncore=None):
    """ori/tar/att: (bs, C, H, W) (f32 or bf16). Returns scalar ILA (f32).

    Note: if any row has tar == ori (||V|| = 0) the result is NaN/Inf, which
    matches the PyTorch reference behavior.
    """
    bs = ori_mid.shape[0]
    ori = ori_mid.reshape(bs, -1)
    tar = tar_mid.reshape(bs, -1)
    att = att_mid.reshape(bs, -1)
    D = ori.shape[1]
    dtype = ori.dtype
    itemsize = jnp.dtype(dtype).itemsize

    if D < 128:
        # degenerate / tiny problem: XLA fusion is already at roofline
        return _ila_jax(ori, tar, att, bs)

    # --- dtype-aware sublane fold (8 f32 / 16 bf16 / 32 int8 rows per vreg) --
    packing = max(8, 32 // itemsize)
    G = 1
    if bs < packing:
        G = packing // math.gcd(bs, packing)
        while G > 1 and D % G != 0:       # only fold if the reshape is free
            G //= 2
    rows = bs * G
    d_per_row = D // G

    # free, row-major reshapes — no HBM copy, no padding
    ori_f = ori.reshape(rows, d_per_row)
    tar_f = tar.reshape(rows, d_per_row)
    att_f = att.reshape(rows, d_per_row)

    # --- VMEM-budget-driven feature tile ------------------------------------
    vmem_cap = _vmem_capacity_bytes()
    if block_bytes is None:
        # 3 input streams x double buffer = 6 resident blocks; keep them
        # under ~60% of VMEM, cap each block at 8 MiB, floor at 1 MiB.
        block_bytes = min(8 << 20, (vmem_cap * 6 // 10) // 6)
        block_bytes = max(block_bytes, 1 << 20)
    max_tk = max(128, (block_bytes // (rows * itemsize)) // 128 * 128)
    tk_need = -(-d_per_row // 128) * 128
    tk = min(tk_need, max_tk)
    if tk > 2048:                          # fori path: keep tk a clean
        if tk >= max_tk:                   # multiple of 1024
            tk = (tk // 1024) * 1024
        else:
            tk = -(-tk // 1024) * 1024
    tk = max(tk, 128)
    n_lane = tk // 128

    n_blocks = -(-d_per_row // tk)

    # --- grid: (core partitions, feature tiles per partition) ---------------
    if ncore is None:
        ncore = _num_tensorcores()
    ncore = max(1, min(int(ncore), n_blocks))
    n_pp = -(-n_blocks // ncore)

    # Clamp the block index so a phantom step (odd n_blocks, ncore=2) re-reads
    # the last valid tile; the in-kernel mask zeroes its contribution.
    in_spec = pl.BlockSpec(
        (rows, tk),
        lambda p, k: (0, jnp.minimum(p * n_pp + k, n_blocks - 1)))
    out_spec = pl.BlockSpec((None, rows, 128), lambda p, k: (p, 0, 0))

    in_block_bytes = rows * tk * itemsize
    vmem_limit = min(int(vmem_cap * 0.9),
                     max(32 << 20, 6 * in_block_bytes + (8 << 20)))

    wv, vv = pl.pallas_call(
        functools.partial(_ila_kernel, n_lane=n_lane, tk=tk, n_pp=n_pp,
                          d_per_row=d_per_row),
        out_shape=(jax.ShapeDtypeStruct((ncore, rows, 128), jnp.float32),
                   jax.ShapeDtypeStruct((ncore, rows, 128), jnp.float32)),
        grid_spec=pltpu.PrefetchScalarGridSpec(
            num_scalar_prefetch=0,
            grid=(ncore, n_pp),
            in_specs=[in_spec, in_spec, in_spec],
            out_specs=[out_spec, out_spec],
        ),
        compiler_params=pltpu.CompilerParams(
            dimension_semantics=("parallel", "arbitrary"),
            vmem_limit_bytes=vmem_limit),
    )(ori_f, tar_f, att_f)

    # --- tiny finalize in JAX: reduce lanes, partitions, and fold groups ----
    wv_row = wv.sum(axis=(0, 2)).reshape(bs, G).sum(axis=1)   # sum(W*V) per row
    vv_row = vv.sum(axis=(0, 2)).reshape(bs, G).sum(axis=1)   # ||V||^2 per row
    return jnp.sum(wv_row / jnp.sqrt(vv_row)) / bs


def ila_reference(ori_mid, tar_mid, att_mid):
    bs = ori_mid.shape[0]
    return _ila_jax(ori_mid.reshape(bs, -1), tar_mid.reshape(bs, -1),
                    att_mid.reshape(bs, -1), bs)


# --------------------------------------------------------------------------
# tests
# --------------------------------------------------------------------------
if __name__ == "__main__":
    key = jax.random.PRNGKey(0)

    # (shape, dtype, kwargs, rtol)
    tests = [
        # bs<8 -> sublane fold (G=4, rows=8), D=1024, single tile, static path
        ((2, 4, 16, 16), jnp.float32, {}, 1e-4),
        # D=315 not divisible by 128 -> in-kernel lane-mask path, rows=3
        ((3, 5, 7, 9), jnp.float32, {}, 1e-4),
        # D=8192 single big tile -> fori_loop(unroll=4) path
        ((8, 32, 16, 16), jnp.float32, {}, 1e-4),
        # forced small tiles + ncore=2 with odd tile count (9) -> multi-tile
        # accumulation, parallel partition split, clamped+masked phantom step
        ((8, 36, 16, 16), jnp.float32,
         {"block_bytes": 32 * 1024, "ncore": 2}, 1e-4),
        # bf16 inputs -> dtype-aware fold to 16 rows, f32 accumulation
        ((4, 16, 16, 16), jnp.bfloat16, {}, 1e-3),
    ]

    for shape, dt, kwargs, rtol in tests:
        k1, k2, k3, key = jax.random.split(key, 4)
        ori_mid = jax.random.normal(k1, shape, dtype=jnp.float32).astype(dt)
        tar_mid = jax.random.normal(k2, shape, dtype=jnp.float32).astype(dt)
        att_mid = jax.random.normal(k3, shape, dtype=jnp.float32).astype(dt)

        out = jax.block_until_ready(ila_pallas(ori_mid, tar_mid, att_mid,
                                               **kwargs))
        ref = jax.block_until_ready(ila_reference(ori_mid, tar_mid, att_mid))
        assert jnp.allclose(out, ref, rtol=rtol, atol=1e-5), \
            (shape, dt, float(out), float(ref))

    print("KERNEL_OK")
</pallas_src>

<mosaic_0001>
module attributes {stable_mosaic.version = 11 : i64} {
  func.func @_ila_kernel(%arg0: i32, %arg1: i32, %arg2: memref<8x256xf32, #tpu.memory_space<vmem>>, %arg3: memref<8x256xf32, #tpu.memory_space<vmem>>, %arg4: memref<8x256xf32, #tpu.memory_space<vmem>>, %arg5: memref<1x8x128xf32, #tpu.memory_space<vmem>>, %arg6: memref<1x8x128xf32, #tpu.memory_space<vmem>>) attributes {dimension_semantics = [#tpu.dimension_semantics<parallel>, #tpu.dimension_semantics<arbitrary>], iteration_bounds = array<i64: 1, 1>, scalar_prefetch = 0 : i64, scratch_operands = 0 : i64, tpu.core_type = #tpu.core_type<tc>, window_params = [{transform_indices = @transform_0, window_bounds = array<i64: 8, 256>}, {transform_indices = @transform_1, window_bounds = array<i64: 8, 256>}, {transform_indices = @transform_2, window_bounds = array<i64: 8, 256>}, {transform_indices = @transform_3, window_bounds = array<i64: 1, 8, 128>}, {transform_indices = @transform_4, window_bounds = array<i64: 1, 8, 128>}]} {
    %c1_i32 = arith.constant 1 : i32
    %0 = arith.muli %arg0, %c1_i32 : i32
    %1 = arith.addi %0, %arg1 : i32
    %c256_i32 = arith.constant 256 : i32
    %2 = arith.muli %1, %c256_i32 : i32
    %3 = tpu.iota {dimensions = array<i32: 1>} : vector<8x128xi32>
    %cst = arith.constant 0.000000e+00 : f32
    %4 = vector.broadcast %cst : f32 to vector<8x128xf32>
    %c0 = arith.constant 0 : index
    %c0_0 = arith.constant 0 : index
    %5 = vector.load %arg2[%c0, %c0_0] : memref<8x256xf32, #tpu.memory_space<vmem>>, vector<8x128xf32>
    %c0_1 = arith.constant 0 : index
    %c0_2 = arith.constant 0 : index
    %6 = vector.load %arg3[%c0_1, %c0_2] : memref<8x256xf32, #tpu.memory_space<vmem>>, vector<8x128xf32>
    %c0_3 = arith.constant 0 : index
    %c0_4 = arith.constant 0 : index
    %7 = vector.load %arg4[%c0_3, %c0_4] : memref<8x256xf32, #tpu.memory_space<vmem>>, vector<8x128xf32>
    %8 = arith.subf %7, %5 : vector<8x128xf32>
    %9 = arith.subf %6, %5 : vector<8x128xf32>
    %c256_i32_5 = arith.constant 256 : i32
    %10 = arith.subi %c256_i32_5, %2 : i32
    %c0_i32 = arith.constant 0 : i32
    %11 = arith.subi %10, %c0_i32 : i32
    %12 = vector.broadcast %11 : i32 to vector<8x128xi32>
    %13 = arith.cmpi slt, %3, %12 : vector<8x128xi32>
    %14 = arith.mulf %8, %9 : vector<8x128xf32>
    %cst_6 = arith.constant 0.000000e+00 : f32
    %15 = vector.broadcast %cst_6 : f32 to vector<8x128xf32>
    %16 = arith.select %13, %14, %15 : vector<8x128xi1>, vector<8x128xf32>
    %17 = arith.addf %4, %16 : vector<8x128xf32>
    %18 = arith.mulf %9, %9 : vector<8x128xf32>
    %cst_7 = arith.constant 0.000000e+00 : f32
    %19 = vector.broadcast %cst_7 : f32 to vector<8x128xf32>
    %20 = arith.select %13, %18, %19 : vector<8x128xi1>, vector<8x128xf32>
    %21 = arith.addf %4, %20 : vector<8x128xf32>
    %c0_8 = arith.constant 0 : index
    %c128 = arith.constant 128 : index
    %22 = vector.load %arg2[%c0_8, %c128] : memref<8x256xf32, #tpu.memory_space<vmem>>, vector<8x128xf32>
    %c0_9 = arith.constant 0 : index
    %c128_10 = arith.constant 128 : index
    %23 = vector.load %arg3[%c0_9, %c128_10] : memref<8x256xf32, #tpu.memory_space<vmem>>, vector<8x128xf32>
    %c0_11 = arith.constant 0 : index
    %c128_12 = arith.constant 128 : index
    %24 = vector.load %arg4[%c0_11, %c128_12] : memref<8x256xf32, #tpu.memory_space<vmem>>, vector<8x128xf32>
    %25 = arith.subf %24, %22 : vector<8x128xf32>
    %26 = arith.subf %23, %22 : vector<8x128xf32>
    %c256_i32_13 = arith.constant 256 : i32
    %27 = arith.subi %c256_i32_13, %2 : i32
    %c128_i32 = arith.constant 128 : i32
    %28 = arith.subi %27, %c128_i32 : i32
    %29 = vector.broadcast %28 : i32 to vector<8x128xi32>
    %30 = arith.cmpi slt, %3, %29 : vector<8x128xi32>
    %31 = arith.mulf %25, %26 : vector<8x128xf32>
    %cst_14 = arith.constant 0.000000e+00 : f32
    %32 = vector.broadcast %cst_14 : f32 to vector<8x128xf32>
    %33 = arith.select %30, %31, %32 : vector<8x128xi1>, vector<8x128xf32>
    %34 = arith.addf %4, %33 : vector<8x128xf32>
    %35 = arith.mulf %26, %26 : vector<8x128xf32>
    %cst_15 = arith.constant 0.000000e+00 : f32
    %36 = vector.broadcast %cst_15 : f32 to vector<8x128xf32>
    %37 = arith.select %30, %35, %36 : vector<8x128xi1>, vector<8x128xf32>
    %38 = arith.addf %4, %37 : vector<8x128xf32>
    %39 = arith.addf %17, %34 : vector<8x128xf32>
    %40 = arith.addf %21, %38 : vector<8x128xf32>
    %c0_i32_16 = arith.constant 0 : i32
    %41 = arith.cmpi eq, %arg1, %c0_i32_16 : i32
    %42 = arith.extui %41 : i1 to i32
    %c0_i32_17 = arith.constant 0 : i32
    %43 = arith.cmpi ne, %42, %c0_i32_17 : i32
    scf.if %43 {
      %c0_20 = arith.constant 0 : index
      %c0_21 = arith.constant 0 : index
      %c0_22 = arith.constant 0 : index
      %47 = vector.load %arg5[%c0_20, %c0_21, %c0_22] : memref<1x8x128xf32, #tpu.memory_space<vmem>>, vector<1x8x128xf32>
      %48 = vector.shape_cast %47 : vector<1x8x128xf32> to vector<8x128xf32>
      %49 = vector.shape_cast %39 : vector<8x128xf32> to vector<1x8x128xf32>
      tpu.vector_store %arg5[%c0_20, %c0_21, %c0_22], %49 {strides = array<i32>} : memref<1x8x128xf32, #tpu.memory_space<vmem>>, vector<1x8x128xf32>,
      %c0_23 = arith.constant 0 : index
      %c0_24 = arith.constant 0 : index
      %c0_25 = arith.constant 0 : index
      %50 = vector.load %arg6[%c0_23, %c0_24, %c0_25] : memref<1x8x128xf32, #tpu.memory_space<vmem>>, vector<1x8x128xf32>
      %51 = vector.shape_cast %50 : vector<1x8x128xf32> to vector<8x128xf32>
      %52 = vector.shape_cast %40 : vector<8x128xf32> to vector<1x8x128xf32>
      tpu.vector_store %arg6[%c0_23, %c0_24, %c0_25], %52 {strides = array<i32>} : memref<1x8x128xf32, #tpu.memory_space<vmem>>, vector<1x8x128xf32>,
    } else {
    }
    %c0_i32_18 = arith.constant 0 : i32
    %44 = arith.cmpi ne, %arg1, %c0_i32_18 : i32
    %45 = arith.extui %44 : i1 to i32
    %c0_i32_19 = arith.constant 0 : i32
    %46 = arith.cmpi ne, %45, %c0_i32_19 : i32
    scf.if %46 {
      %c0_20 = arith.constant 0 : index
      %c0_21 = arith.constant 0 : index
      %c0_22 = arith.constant 0 : index
      %47 = vector.load %arg5[%c0_20, %c0_21, %c0_22] : memref<1x8x128xf32, #tpu.memory_space<vmem>>, vector<1x8x128xf32>
      %48 = vector.shape_cast %47 : vector<1x8x128xf32> to vector<8x128xf32>
      %49 = arith.addf %48, %39 : vector<8x128xf32>
      %c0_23 = arith.constant 0 : index
      %c0_24 = arith.constant 0 : index
      %c0_25 = arith.constant 0 : index
      %50 = vector.load %arg5[%c0_23, %c0_24, %c0_25] : memref<1x8x128xf32, #tpu.memory_space<vmem>>, vector<1x8x128xf32>
      %51 = vector.shape_cast %50 : vector<1x8x128xf32> to vector<8x128xf32>
      %52 = vector.shape_cast %49 : vector<8x128xf32> to vector<1x8x128xf32>
      tpu.vector_store %arg5[%c0_23, %c0_24, %c0_25], %52 {strides = array<i32>} : memref<1x8x128xf32, #tpu.memory_space<vmem>>, vector<1x8x128xf32>,
      %c0_26 = arith.constant 0 : index
      %c0_27 = arith.constant 0 : index
      %c0_28 = arith.constant 0 : index
      %53 = vector.load %arg6[%c0_26, %c0_27, %c0_28] : memref<1x8x128xf32, #tpu.memory_space<vmem>>, vector<1x8x128xf32>
      %54 = vector.shape_cast %53 : vector<1x8x128xf32> to vector<8x128xf32>
      %55 = arith.addf %54, %40 : vector<8x128xf32>
      %c0_29 = arith.constant 0 : index
      %c0_30 = arith.constant 0 : index
      %c0_31 = arith.constant 0 : index
      %56 = vector.load %arg6[%c0_29, %c0_30, %c0_31] : memref<1x8x128xf32, #tpu.memory_space<vmem>>, vector<1x8x128xf32>
      %57 = vector.shape_cast %56 : vector<1x8x128xf32> to vector<8x128xf32>
      %58 = vector.shape_cast %55 : vector<8x128xf32> to vector<1x8x128xf32>
      tpu.vector_store %arg6[%c0_29, %c0_30, %c0_31], %58 {strides = array<i32>} : memref<1x8x128xf32, #tpu.memory_space<vmem>>, vector<1x8x128xf32>,
    } else {
    }
    return
  }
  func.func @transform_0(%arg0: i32, %arg1: i32) -> (i32, i32) {
    %c1_i32 = arith.constant 1 : i32
    %0 = arith.muli %arg0, %c1_i32 : i32
    %1 = arith.addi %0, %arg1 : i32
    %c0_i32 = arith.constant 0 : i32
    %2 = arith.minsi %1, %c0_i32 : i32
    %c0_i32_0 = arith.constant 0 : i32
    %c0_i32_1 = arith.constant 0 : i32
    return %c0_i32_0, %2 : i32, i32
  }
  func.func @transform_1(%arg0: i32, %arg1: i32) -> (i32, i32) {
    %c1_i32 = arith.constant 1 : i32
    %0 = arith.muli %arg0, %c1_i32 : i32
    %1 = arith.addi %0, %arg1 : i32
    %c0_i32 = arith.constant 0 : i32
    %2 = arith.minsi %1, %c0_i32 : i32
    %c0_i32_0 = arith.constant 0 : i32
    %c0_i32_1 = arith.constant 0 : i32
    return %c0_i32_0, %2 : i32, i32
  }
  func.func @transform_2(%arg0: i32, %arg1: i32) -> (i32, i32) {
    %c1_i32 = arith.constant 1 : i32
    %0 = arith.muli %arg0, %c1_i32 : i32
    %1 = arith.addi %0, %arg1 : i32
    %c0_i32 = arith.constant 0 : i32
    %2 = arith.minsi %1, %c0_i32 : i32
    %c0_i32_0 = arith.constant 0 : i32
    %c0_i32_1 = arith.constant 0 : i32
    return %c0_i32_0, %2 : i32, i32
  }
  func.func @transform_3(%arg0: i32, %arg1: i32) -> (i32, i32, i32) {
    %c0_i32 = arith.constant 0 : i32
    %c0_i32_0 = arith.constant 0 : i32
    %c0_i32_1 = arith.constant 0 : i32
    return %arg0, %c0_i32, %c0_i32_0 : i32, i32, i32
  }
  func.func @transform_4(%arg0: i32, %arg1: i32) -> (i32, i32, i32) {
    %c0_i32 = arith.constant 0 : i32
    %c0_i32_0 = arith.constant 0 : i32
    %c0_i32_1 = arith.constant 0 : i32
    return %arg0, %c0_i32, %c0_i32_0 : i32, i32, i32
  }
}

</mosaic_0001>

<bundles_post_ra>
// kernel: tpu_custom_call.1
= control target key start
LH: loop header
LB: loop body
LE: loop exit
PB: predicated region body
PF: predicated region fallthrough
CT: control target
= control target key end

     0   :  { %10 = vsyncpa [#allocation3], 0  ;;  %s382_s0 = inlined_call_operand.hbm [shape: f32[8,256], index: 0, kind: input, shape index: {}]   ;;  %s383_s1 = inlined_call_operand.hbm [shape: f32[8,256], index: 1, kind: input, shape index: {}]   ;;  %s384_s2 = inlined_call_operand.hbm [shape: f32[8,256], index: 2, kind: input, shape index: {}]   ;;  %s385_s3 = inlined_call_operand.hbm [shape: f32[1,8,128], index: 3, kind: output, shape index: {0}]   ;;  %s386_s4 = inlined_call_operand.hbm [shape: f32[1,8,128], index: 4, kind: output, shape index: {1}]  }
   0x1   :  { %11 = vsyncpa [#allocation6], 0 }
   0x2   :  { %12 = vsyncpa [#allocation4], 0 }
   0x3   :  { %13 = vsyncpa [#allocation10], 0  ;;  %s292_s15 = smov [#allocation5]   ;;  %s293_s17 = smov [#allocation2]  }
   0x4   :  { %s42_s16 = sshll.u32 %s292_s15, 4  ;;  %s26_s18 = sshll.u32 %s293_s17, 4  ;;  %s43_s16 = int_to_ptr.vmem [resolvable:$true] %s42_s16  ;;  %s27_s18 = int_to_ptr.vmem [resolvable:$true] %s26_s18 }
   0x5   :  { %s174_s21 = scalar_lea.hbm %s383_s1, 256 }
   0x6   :  { %p175_p0 = scmp.ne.s32.totalorder %s383_s1, %s174_s21  ;;  %p178_p1 = scmp.lt.u32.totalorder %s174_s21, %s383_s1 }
   0x8   :  { %p180_p2 = pnand %p178_p1, %p175_p0 }
   0xa   :  { %183 = shalt.err (!%p180_p2)
}
   0xb   :  { %s184_s26 = scalar_lea.vmem %s43_s16, 256  ;;  %p189_p4 = scmp.lt.s32.totalorder %s43_s16, %s43_s16 }
   0xc   :  { %p185_p3 = scmp.ne.s32.totalorder %s43_s16, %s184_s26  ;;  %p190_p5 = scmp.lt.s32.totalorder %s184_s26, %s184_s26 }
   0xe   :  { %p191_p6 = por %p190_p5, %p189_p4 }
  0x10   :  { %p192_p7 = pnand %p191_p6, %p185_p3 }
  0x12   :  { %195 = shalt.err (!%p192_p7)
}
  0x13   :  { %45 = dma.hbm_to_vmem [thread:$0]  %s383_s1, 256, %s43_s16, [#allocation6]  }
  0x14   :  { %s196_s5 = scalar_lea.hbm %s382_s0, 256 }
  0x15   :  { %p197_p8 = scmp.ne.s32.totalorder %s382_s0, %s196_s5  ;;  %p200_p9 = scmp.lt.u32.totalorder %s196_s5, %s382_s0 }
  0x17   :  { %p202_p10 = pnand %p200_p9, %p197_p8 }
  0x19   :  { %205 = shalt.err (!%p202_p10)
}
  0x1a   :  { %s206_s10 = scalar_lea.vmem %s27_s18, 256  ;;  %p211_p12 = scmp.lt.s32.totalorder %s27_s18, %s27_s18 }
  0x1b   :  { %p207_p11 = scmp.ne.s32.totalorder %s27_s18, %s206_s10  ;;  %p212_p13 = scmp.lt.s32.totalorder %s206_s10, %s206_s10 }
  0x1d   :  { %p213_p0 = por %p212_p13, %p211_p12 }
  0x1f   :  { %p214_p1 = pnand %p213_p0, %p207_p11 }
  0x21   :  { %217 = shalt.err (!%p214_p1)
}
  0x22   :  { %29 = dma.hbm_to_vmem [thread:$0]  %s382_s0, 256, %s27_s18, [#allocation3]  }
  0x23   :  { %s294_s12 = smov [#allocation7]   ;;  %s218_s16 = scalar_lea.hbm %s384_s2, 256 }
  0x24   :  { %s58_s13 = sshll.u32 %s294_s12, 4  ;;  %p219_p2 = scmp.ne.s32.totalorder %s384_s2, %s218_s16  ;;  %s59_s13 = int_to_ptr.vmem [resolvable:$true] %s58_s13 }
  0x25   :  { %p222_p3 = scmp.lt.u32.totalorder %s218_s16, %s384_s2 }
  0x27   :  { %p224_p4 = pnand %p222_p3, %p219_p2 }
  0x29   :  { %227 = shalt.err (!%p224_p4)
}
  0x2a   :  { %s228_s22 = scalar_lea.vmem %s59_s13, 256  ;;  %p233_p6 = scmp.lt.s32.totalorder %s59_s13, %s59_s13 }
  0x2b   :  { %p229_p5 = scmp.ne.s32.totalorder %s59_s13, %s228_s22  ;;  %p234_p7 = scmp.lt.s32.totalorder %s228_s22, %s228_s22 }
  0x2d   :  { %p235_p8 = por %p234_p7, %p233_p6 }
  0x2f   :  { %p236_p9 = pnand %p235_p8, %p229_p5 }
  0x31   :  { %239 = shalt.err (!%p236_p9)
}
  0x32   :  { %61 = dma.hbm_to_vmem [thread:$0]  %s384_s2, 256, %s59_s13, [#allocation6]  }
  0x33   :  { %284 = dma.done.wait [#allocation3], 256  }
  0x34   :  { %285 = vsyncadd [#allocation3], 4294967040 }
  0x35   :  { %286 = dma.done.wait [#allocation6], 512  }
  0x36   :  { %287 = vsyncadd [#allocation6], 4294966784  ;;  %v87_v0 = vld [vmem:[#allocation2] sm:$0xff]  ;;  %v88_v1 = vld [vmem:[#allocation5] sm:$0xff]  ;;  %s295_s23 = smov [#allocation8]   ;;  %s296_s2 = smov [#allocation9]  }
  0x37   :  { %v89_v2 = vld [vmem:[#allocation7] sm:$0xff]  ;;  %v91_v4 = vsub.f32 %v88_v1, %v87_v0  ;;  %v101_v5 = vld [vmem:[#allocation2 + $0x8] sm:$0xff]  ;;  %v102_v6 = vld [vmem:[#allocation5 + $0x8] sm:$0xff]  ;;  %s139_s24 = sshll.u32 %s295_s23, 4  ;;  %s149_s25 = sshll.u32 %s296_s2, 4  ;;  %s140_s24 = int_to_ptr.vmem [resolvable:$true] %s139_s24  ;;  %s150_s25 = int_to_ptr.vmem [resolvable:$true] %s149_s25 }
  0x38   :  { %v90_v3 = vsub.f32 %v89_v2, %v87_v0  ;;  %v103_v7 = vld [vmem:[#allocation7 + $0x8] sm:$0xff]  ;;  %v105_v9 = vsub.f32 %v102_v6, %v101_v5  ;;  %s240_s26 = scalar_lea.vmem %s140_s24, 128  ;;  %p245_p11 = scmp.lt.s32.totalorder %s140_s24, %s140_s24 }
  0x39   :  { %v104_v8 = vsub.f32 %v103_v7, %v101_v5  ;;  %v98_v11 = vmul.f32 %v91_v4, %v91_v4  ;;  %p241_p10 = scmp.ne.s32.totalorder %s140_s24, %s240_s26  ;;  %p246_p12 = scmp.lt.s32.totalorder %s240_s26, %s240_s26 }
  0x3a   :  { %v95_v10 = vmul.f32 %v91_v4, %v90_v3  ;;  %v112_v13 = vmul.f32 %v105_v9, %v105_v9 }
  0x3b   :  { %v109_v12 = vmul.f32 %v105_v9, %v104_v8  ;;  %p247_p13 = por %p246_p12, %p245_p11 }
  0x3c   :  { %v116_v15 = vadd.f32 %v112_v13, %v98_v11 }
  0x3d   :  { %v115_v14 = vadd.f32 %v109_v12, %v95_v10  ;;  %p248_p0 = pnand %p247_p13, %p241_p10 }
  0x3e   :  { %122 = vst [vmem:[#allocation9] sm:$0xff] %v116_v15 }
  0x3f   :  { %121 = vst [vmem:[#allocation8] sm:$0xff] %v115_v14 }
  0x40   :  { %251 = shalt.err (!%p248_p0)
}
  0x41   :  { %s252_s29 = scalar_lea.hbm %s385_s3, 128 }
  0x42   :  { %p253_p1 = scmp.ne.s32.totalorder %s385_s3, %s252_s29  ;;  %p256_p2 = scmp.lt.u32.totalorder %s252_s29, %s385_s3 }
  0x44   :  { %p258_p3 = pnand %p256_p2, %p253_p1 }
  0x46   :  { %261 = shalt.err (!%p258_p3)
}
  0x47   :  { %142 = dma.vmem_to_hbm [thread:$0]  %s140_s24, 128, %s385_s3, [#allocation4]  }
  0x48   :  { %s262_s10 = scalar_lea.vmem %s150_s25, 128  ;;  %p267_p5 = scmp.lt.s32.totalorder %s150_s25, %s150_s25 }
  0x49   :  { %p263_p4 = scmp.ne.s32.totalorder %s150_s25, %s262_s10  ;;  %p268_p6 = scmp.lt.s32.totalorder %s262_s10, %s262_s10 }
  0x4b   :  { %p269_p7 = por %p268_p6, %p267_p5 }
  0x4d   :  { %p270_p8 = pnand %p269_p7, %p263_p4 }
  0x4f   :  { %273 = shalt.err (!%p270_p8)
}
  0x50   :  { %s274_s12 = scalar_lea.hbm %s386_s4, 128 }
  0x51   :  { %p275_p9 = scmp.ne.s32.totalorder %s386_s4, %s274_s12  ;;  %p278_p10 = scmp.lt.u32.totalorder %s274_s12, %s386_s4 }
  0x53   :  { %p280_p11 = pnand %p278_p10, %p275_p9 }
  0x55   :  { %283 = shalt.err (!%p280_p11)
}
  0x56   :  { %152 = dma.vmem_to_hbm [thread:$0]  %s150_s25, 128, %s386_s4, [#allocation10]  }
  0x57   :  { %288 = dma.done.wait [#allocation4], 128  }
  0x58   :  { %289 = vsyncadd [#allocation4], 4294967168 }
  0x59   :  { %290 = dma.done.wait [#allocation10], 128  }
  0x5a   :  { %291 = vsyncadd [#allocation10], 4294967168 }
  0x5b   :  { %159 = vsyncpa [#allocation3], 1 }
  0x5c   :  { %160 = vsyncpa [#allocation6], 1 }
  0x5d   :  { %161 = vsyncpa [#allocation4], 1 }
  0x5e   :  { %162 = vsyncpa [#allocation10], 1 }

</bundles_post_ra>
